<compile_context>
chip_gen: v7x
topology: tpu7x:2x2x1
jax: 0.10.0
libtpu: 0.0.40
codegen_flags: <defaults>
</compile_context>

<pallas_src>
import jax
import jax.numpy as jnp
from jax.experimental import pallas as pl
from jax.experimental.pallas import tpu as pltpu

EPS = 1e-8

# Conservative per-call VMEM budget (fits the 32 MiB default scoped limit on every chip).
_VMEM_BUDGET_BYTES = 32 << 20


def unit_norm_kernel(atoms_ref, out_ref):
    """L2-normalize each row of one (TR, K) block (norm math in f32)."""
    a = atoms_ref[...].astype(jnp.float32)                 # (TR, K) in f32
    sq_sum = jnp.sum(a * a, axis=-1, keepdims=True)        # (TR, 1)
    # Reference epsilon semantics: x / (||x|| + eps), applied as a broadcast multiply.
    scale = 1.0 / (jnp.sqrt(sq_sum) + EPS)
    out_ref[...] = (a * scale).astype(out_ref.dtype)


def _pick_row_tile(n_atoms, kernel_size, itemsize, max_rows=256):
    """Row tile that divides n_atoms, is sublane-friendly, and respects the VMEM budget.

    Footprint per tile: (input + output) x double-buffered = 4 * tr * K * itemsize.
    """
    def fits(tr):
        return 4 * tr * kernel_size * itemsize <= _VMEM_BUDGET_BYTES

    if n_atoms <= max_rows and fits(n_atoms):
        return n_atoms
    # Largest divisor of n_atoms that is a multiple of 8, <= max_rows, and fits VMEM.
    for tr in range(min(max_rows, n_atoms), 7, -8):
        if n_atoms % tr == 0 and fits(tr):
            return tr
    # Fallback: full dim (always a legal block shape); shapes here are tiny in practice.
    return n_atoms


def model_forward(x, atoms, n_samples):
    """Equivalent of Model.forward: unit_norm(atoms) zero-padded to n_samples columns.

    `x` is accepted (PyTorch signature parity) but unused by the truncated forward.
    """
    del x  # unused by the truncated forward, kept for signature parity
    n_atoms, kernel_size = atoms.shape
    assert n_samples >= kernel_size, "n_samples must be >= kernel_size"

    itemsize = jnp.dtype(atoms.dtype).itemsize
    tr = _pick_row_tile(n_atoms, kernel_size, itemsize)
    grid = (pl.cdiv(n_atoms, tr),)

    normed = pl.pallas_call(
        unit_norm_kernel,
        out_shape=jax.ShapeDtypeStruct((n_atoms, kernel_size), atoms.dtype),
        grid_spec=pltpu.PrefetchScalarGridSpec(
            num_scalar_prefetch=0,
            grid=grid,
            # Block width == full kernel_size, so the (8,128) lane constraint always holds.
            in_specs=[pl.BlockSpec((tr, kernel_size), lambda i: (i, 0))],
            out_specs=pl.BlockSpec((tr, kernel_size), lambda i: (i, 0)),
        ),
        compiler_params=pltpu.CompilerParams(
            dimension_semantics=("parallel",),
            vmem_limit_bytes=_VMEM_BUDGET_BYTES,
        ),
    )(atoms)

    # Zero-pad outside the kernel: XLA emits a zero-broadcast pad that writes at full HBM
    # bandwidth, instead of streaming 98%+ zero blocks through vregs/VMEM/DMA in Pallas.
    return jnp.pad(normed, ((0, 0), (0, n_samples - kernel_size)))


if __name__ == "__main__":
    # Small shapes consistent with the module (original: n_samples=2**15, kernel_size=512,
    # model_dim=128).  Scaled down for a quick synthetic run.
    n_atoms = 8
    kernel_size = 256
    n_samples = 1024
    bottleneck = 32
    n_coeffs = n_samples // 2 + 1
    batch = 2

    key = jax.random.PRNGKey(0)
    k_atoms, k_x, k_enc, k_dec = jax.random.split(key, 4)

    # Parameter init mirroring nn.Parameter(torch.zeros(n_atoms, K).uniform_(-1, 1))
    atoms = jax.random.uniform(
        k_atoms, (n_atoms, kernel_size), dtype=jnp.float32, minval=-1.0, maxval=1.0
    )
    # encode / decode Linear weights (declared in __init__, unused by forward)
    enc_w = jax.random.normal(k_enc, (bottleneck, n_coeffs * 2), jnp.float32) * 0.1
    dec_w = jax.random.normal(k_dec, (n_coeffs * 2, bottleneck), jnp.float32) * 0.1
    # TODO(synk): encode/decode/approx_conv paths (rfft + Linear) are not reachable
    # from the truncated forward and are not implemented in the kernel.

    x = jax.random.normal(k_x, (batch, n_samples), jnp.float32)

    out = model_forward(x, atoms, n_samples)
    out = jax.block_until_ready(out)

    # Sanity check against a pure-JAX reference.
    ref_norm = atoms / (jnp.linalg.norm(atoms, axis=-1, keepdims=True) + EPS)
    ref = jnp.pad(ref_norm, ((0, 0), (0, n_samples - kernel_size)))
    assert out.shape == (n_atoms, n_samples)
    assert jnp.allclose(out, ref, atol=1e-5, rtol=1e-5)

    print("KERNEL_OK")
</pallas_src>

<mosaic_0001>
module attributes {stable_mosaic.version = 11 : i64} {
  func.func @unit_norm_kernel(%arg0: i32, %arg1: memref<8x256xf32, #tpu.memory_space<vmem>>, %arg2: memref<8x256xf32, #tpu.memory_space<vmem>>) attributes {dimension_semantics = [#tpu.dimension_semantics<parallel>], iteration_bounds = array<i64: 1>, scalar_prefetch = 0 : i64, scratch_operands = 0 : i64, tpu.core_type = #tpu.core_type<tc>, window_params = [{transform_indices = @transform_0, window_bounds = array<i64: 8, 256>}, {transform_indices = @transform_1, window_bounds = array<i64: 8, 256>}]} {
    %c0 = arith.constant 0 : index
    %c0_0 = arith.constant 0 : index
    %0 = vector.load %arg1[%c0, %c0_0] : memref<8x256xf32, #tpu.memory_space<vmem>>, vector<8x256xf32>
    %1 = arith.mulf %0, %0 : vector<8x256xf32>
    %cst = arith.constant dense<0.000000e+00> : vector<8xf32>
    %2 = vector.multi_reduction <add>, %1, %cst [1] : vector<8x256xf32> to vector<8xf32>
    %3 = vector.shape_cast %2 : vector<8xf32> to vector<8x1xf32>
    %4 = math.sqrt %3 : vector<8x1xf32>
    %cst_1 = arith.constant 9.99999993E-9 : f32
    %5 = vector.broadcast %cst_1 : f32 to vector<8x1xf32>
    %6 = arith.addf %4, %5 : vector<8x1xf32>
    %cst_2 = arith.constant 1.000000e+00 : f32
    %7 = vector.broadcast %cst_2 : f32 to vector<8x1xf32>
    %8 = arith.divf %7, %6 : vector<8x1xf32>
    %9 = vector.broadcast %8 : vector<8x1xf32> to vector<8x256xf32>
    %10 = arith.mulf %0, %9 : vector<8x256xf32>
    %c0_3 = arith.constant 0 : index
    %c0_4 = arith.constant 0 : index
    %11 = vector.load %arg2[%c0_3, %c0_4] : memref<8x256xf32, #tpu.memory_space<vmem>>, vector<8x256xf32>
    tpu.vector_store %arg2[%c0_3, %c0_4], %10 {strides = array<i32>} : memref<8x256xf32, #tpu.memory_space<vmem>>, vector<8x256xf32>,
    return
  }
  func.func @transform_0(%arg0: i32) -> (i32, i32) {
    %c0_i32 = arith.constant 0 : i32
    %c0_i32_0 = arith.constant 0 : i32
    return %arg0, %c0_i32 : i32, i32
  }
  func.func @transform_1(%arg0: i32) -> (i32, i32) {
    %c0_i32 = arith.constant 0 : i32
    %c0_i32_0 = arith.constant 0 : i32
    return %arg0, %c0_i32 : i32, i32
  }
}

</mosaic_0001>

<bundles_post_ra>
// kernel: tpu_custom_call.1
= control target key start
LH: loop header
LB: loop body
LE: loop exit
PB: predicated region body
PF: predicated region fallthrough
CT: control target
= control target key end

     0   :  { %6 = vsyncpa [#allocation3], 0  ;;  %s147_s0 = inlined_call_operand.hbm [shape: f32[8,256], index: 0, kind: input, shape index: {}]   ;;  %s148_s1 = inlined_call_operand.hbm [shape: f32[8,256], index: 1, kind: output, shape index: {}]  }
   0x1   :  { %7 = vsyncpa [#allocation4], 0  ;;  %s111_s6 = smov [#allocation2]   ;;  %s63_s10 = scalar_lea.hbm %s147_s0, 256 }
   0x2   :  { %s14_s7 = sshll.u32 %s111_s6, 4  ;;  %p64_p0 = scmp.ne.s32.totalorder %s147_s0, %s63_s10  ;;  %s15_s7 = int_to_ptr.vmem [resolvable:$true] %s14_s7 }
   0x3   :  { %p67_p1 = scmp.lt.u32.totalorder %s63_s10, %s147_s0 }
   0x5   :  { %p69_p2 = pnand %p67_p1, %p64_p0 }
   0x7   :  { %72 = shalt.err (!%p69_p2)
}
   0x8   :  { %s73_s15 = scalar_lea.vmem %s15_s7, 256  ;;  %p78_p4 = scmp.lt.s32.totalorder %s15_s7, %s15_s7 }
   0x9   :  { %p74_p3 = scmp.ne.s32.totalorder %s15_s7, %s73_s15  ;;  %p79_p5 = scmp.lt.s32.totalorder %s73_s15, %s73_s15 }
   0xb   :  { %p80_p6 = por %p79_p5, %p78_p4 }
   0xd   :  { %p81_p7 = pnand %p80_p6, %p74_p3 }
   0xf   :  { %84 = shalt.err (!%p81_p7)
}
  0x10   :  { %17 = dma.hbm_to_vmem [thread:$0]  %s147_s0, 256, %s15_s7, [#allocation3]  }
  0x11   :  { %107 = dma.done.wait [#allocation3], 256  }
  0x12   :  { %108 = vsyncadd [#allocation3], 4294967040  ;;  %v21_v0 = vld [vmem:[#allocation2] sm:$0xff]  ;;  %v22_v1 = vld [vmem:[#allocation2 + $0x8] sm:$0xff]  ;;  %s112_s0 = smov [#allocation5]  }
  0x13   :  { %v23_v2 = vmul.f32 %v21_v0, %v21_v0  ;;  %v24_v3 = vmul.f32 %v22_v1, %v22_v1  ;;  %s48_s18 = sshll.u32 %s112_s0, 4  ;;  %s49_s18 = int_to_ptr.vmem [resolvable:$true] %s48_s18 }
  0x14   :  { %s85_s19 = scalar_lea.vmem %s49_s18, 256  ;;  %p90_p9 = scmp.lt.s32.totalorder %s49_s18, %s49_s18 }
  0x15   :  { %v25_v4 = vadd.f32 %v24_v3, %v23_v2  ;;  %p86_p8 = scmp.ne.s32.totalorder %s49_s18, %s85_s19  ;;  %p91_p10 = scmp.lt.s32.totalorder %s85_s19, %s85_s19 }
  0x17   :  { %26 = vadd.xlane.f32.xlu0 %v25_v4  ;;  %p92_p11 = por %p91_p10, %p90_p9 }
  0x19   :  { %p93_p12 = pnand %p92_p11, %p86_p8 }
  0xa4   :  { %v27_v5 = vpop.xlane.xlu0 %26 }
  0xa5   :  { %59 = vrsqrt.f32 %v27_v5  ;;  %vm30_vm0 = vcmp.eq.f32.partialorder %v27_v5, inf  ;;  %v33_v8 = vand.u32 2147483648, %v27_v5  ;;  %vm32_vm1 = vcmp.eq.f32.partialorder %v27_v5, 0.0 }
  0xaf   :  { %v60_v6 = vpop.eup %59 }
  0xb0   :  { %v29_v7 = vmul.f32 %v60_v6, %v27_v5 }
  0xb2   :  { %v31_v9 = vsel %vm30_vm0, %v27_v5, %v29_v7 }
  0xb3   :  { %v34_v10 = vsel %vm32_vm1, %v33_v8, %v31_v9 }
  0xb4   :  { %v35_v11 = vadd.f32 1e-08, %v34_v10 }
  0xb6   :  { %61 = vrcp.f32 %v35_v11 }
  0xc0   :  { %v62_v12 = vpop.eup %61 }
  0xc1   :  { %v38_v13 = vmul.f32 %v62_v12, %v21_v0  ;;  %v39_v14 = vmul.f32 %v62_v12, %v22_v1 }
  0xc3   :  { %40 = vst [vmem:[#allocation5] sm:$0xff] %v38_v13  ;;  %41 = vst [vmem:[#allocation5 + $0x8] sm:$0xff] %v39_v14 }
  0xc4   :  { %96 = shalt.err (!%p93_p12)
}
  0xc5   :  { %s97_s22 = scalar_lea.hbm %s148_s1, 256 }
  0xc6   :  { %p98_p13 = scmp.ne.s32.totalorder %s148_s1, %s97_s22  ;;  %p101_p0 = scmp.lt.u32.totalorder %s97_s22, %s148_s1 }
  0xc8   :  { %p103_p1 = pnand %p101_p0, %p98_p13 }
  0xca   :  { %106 = shalt.err (!%p103_p1)
}
  0xcb   :  { %51 = dma.vmem_to_hbm [thread:$0]  %s49_s18, 256, %s148_s1, [#allocation4]  }
  0xcc   :  { %109 = dma.done.wait [#allocation4], 256  }
  0xcd   :  { %110 = vsyncadd [#allocation4], 4294967040 }
  0xce   :  { %55 = vsyncpa [#allocation3], 1 }
  0xcf   :  { %56 = vsyncpa [#allocation4], 1 }

</bundles_post_ra>
